<compile_context>
chip_gen: v5e
topology: v5e:2x2
jax: 0.10.0
libtpu: 0.0.40
codegen_flags: <defaults>
</compile_context>

<pallas_src>
import math

import jax
import jax.numpy as jnp
from jax.experimental import pallas as pl
from jax.experimental.pallas import tpu as pltpu

_LANE = 128


def _round_up(n, m):
    return ((n + m - 1) // m) * m


def _actor_mean_kernel(x_ref, w1_ref, b1_ref, w2_ref, b2_ref, w3_ref, b3_ref, o_ref):
    # x tile: [TILE_B, obs] bf16; weights resident bf16; biases f32.
    h1 = jnp.dot(x_ref[...], w1_ref[...], preferred_element_type=jnp.float32)
    h1 = jnp.tanh(h1 + b1_ref[...])                       # f32 bias + tanh (EUP)
    h2 = jnp.dot(h1.astype(w2_ref.dtype), w2_ref[...],
                 preferred_element_type=jnp.float32)
    h2 = jnp.tanh(h2 + b2_ref[...])
    out = jnp.dot(h2.astype(w3_ref.dtype), w3_ref[...],   # [TILE_B, 128] lane-dense
                  preferred_element_type=jnp.float32)
    o_ref[...] = (out + b3_ref[...]).astype(o_ref.dtype)


def ppo_actor_forward(x, params, *, tile_b=512):
    """Fused PPOActor mean-MLP in one Pallas kernel.

    x: [batch, observation_dim] float32
    params: dict with w1[obs,E], b1[1,E], w2[E,E], b2[1,E],
            w3[E,A_pad] (zero-padded to 128 lanes), b3[1,A_pad],
            logstd[1,action_dim]
    returns: (action_mean [batch, action_dim], action_logstd [batch, action_dim])
    """
    batch, obs_dim = x.shape
    action_dim = params["logstd"].shape[1]
    E = params["w1"].shape[1]
    a_pad = params["w3"].shape[1]

    # bf16 MXU operands; biases stay f32.
    xb = x.astype(jnp.bfloat16)
    w1 = params["w1"].astype(jnp.bfloat16)
    w2 = params["w2"].astype(jnp.bfloat16)
    w3 = params["w3"].astype(jnp.bfloat16)
    b1, b2, b3 = params["b1"], params["b2"], params["b3"]

    tb = min(tile_b, batch)
    grid = (pl.cdiv(batch, tb),)

    const = lambda i: (0, 0)   # weights/biases: same block every step -> resident
    cost = pl.CostEstimate(
        flops=2 * batch * (obs_dim * E + E * E + E * a_pad),
        transcendentals=2 * batch * E,
        bytes_accessed=(batch * obs_dim * 2
                        + (obs_dim * E + E * E + E * a_pad) * 2
                        + (2 * E + a_pad) * 4
                        + batch * a_pad * 4),
    )

    mean_padded = pl.pallas_call(
        _actor_mean_kernel,
        out_shape=jax.ShapeDtypeStruct((batch, a_pad), jnp.float32),
        grid=grid,
        in_specs=[
            pl.BlockSpec((tb, obs_dim), lambda i: (i, 0)),  # x tile moves with grid
            pl.BlockSpec((obs_dim, E), const),
            pl.BlockSpec((1, E), const),
            pl.BlockSpec((E, E), const),
            pl.BlockSpec((1, E), const),
            pl.BlockSpec((E, a_pad), const),
            pl.BlockSpec((1, a_pad), const),
        ],
        out_specs=pl.BlockSpec((tb, a_pad), lambda i: (i, 0)),
        compiler_params=pltpu.CompilerParams(
            dimension_semantics=("parallel",),
        ),
        cost_estimate=cost,
    )(xb, w1, b1, w2, b2, w3, b3)

    action_mean = mean_padded[:, :action_dim]
    action_logstd = jnp.broadcast_to(params["logstd"], action_mean.shape)
    return action_mean, action_logstd


def _orthogonal(key, out_dim, in_dim, gain):
    """PyTorch nn.init.orthogonal_ semantics, returned transposed to [in, out]."""
    rows, cols = out_dim, in_dim
    flat = jax.random.normal(key, (rows, cols), dtype=jnp.float32)
    if rows < cols:
        flat = flat.T
    q, r = jnp.linalg.qr(flat)
    d = jnp.diagonal(r)
    q = q * jnp.where(d == 0, 1.0, jnp.sign(d))  # avoid zero column when diag(R)==0
    if rows < cols:
        q = q.T
    return (gain * q).T  # store as [in, out] so the kernel computes x @ W


def init_ppo_actor_params(key, observation_dim, action_dim, expanse_dim=64):
    k1, k2, k3 = jax.random.split(key, 3)
    a_pad = _round_up(action_dim, _LANE)
    w3_core = _orthogonal(k3, action_dim, expanse_dim, 0.01)  # [E, action_dim]
    w3 = jnp.zeros((expanse_dim, a_pad), jnp.float32).at[:, :action_dim].set(w3_core)
    return {
        "w1": _orthogonal(k1, expanse_dim, observation_dim, math.sqrt(2.0)),
        "b1": jnp.zeros((1, expanse_dim), jnp.float32),
        "w2": _orthogonal(k2, expanse_dim, expanse_dim, math.sqrt(2.0)),
        "b2": jnp.zeros((1, expanse_dim), jnp.float32),
        "w3": w3,
        "b3": jnp.zeros((1, a_pad), jnp.float32),
        "logstd": jnp.zeros((1, action_dim), jnp.float32),
    }


def _reference(x, params):
    """Pure-JAX reference following the exact bf16-operand / f32-accumulate path."""
    bf = lambda a: a.astype(jnp.bfloat16).astype(jnp.float32)
    A = params["logstd"].shape[1]
    h1 = jnp.tanh(bf(x) @ bf(params["w1"]) + params["b1"])
    h2 = jnp.tanh(bf(h1) @ bf(params["w2"]) + params["b2"])
    mean = bf(h2) @ bf(params["w3"])[:, :A] + params["b3"][:, :A]
    logstd = jnp.broadcast_to(params["logstd"], mean.shape)
    return mean, logstd


if __name__ == "__main__":
    observation_dim = 32
    action_dim = 4
    expanse_dim = 64
    batch = 8

    key = jax.random.PRNGKey(0)
    kx, kp = jax.random.split(key)
    x = jax.random.normal(kx, (batch, observation_dim), dtype=jnp.float32)
    params = init_ppo_actor_params(kp, observation_dim, action_dim, expanse_dim)

    mean, logstd = jax.jit(ppo_actor_forward)(x, params)
    mean = jax.block_until_ready(mean)
    logstd = jax.block_until_ready(logstd)

    ref_mean, ref_logstd = _reference(x, params)
    assert mean.shape == (batch, action_dim), mean.shape
    assert logstd.shape == (batch, action_dim), logstd.shape
    assert jnp.allclose(mean, ref_mean, atol=1e-4, rtol=1e-4), (
        f"mean mismatch: max abs err {jnp.max(jnp.abs(mean - ref_mean))}"
    )
    assert jnp.allclose(logstd, ref_logstd, atol=1e-6), "logstd mismatch"
    print("KERNEL_OK")
</pallas_src>

<mosaic_0001>
module attributes {stable_mosaic.version = 11 : i64} {
  func.func @_actor_mean_kernel(%arg0: i32, %arg1: memref<8x32xbf16, #tpu.memory_space<vmem>>, %arg2: memref<32x64xbf16, #tpu.memory_space<vmem>>, %arg3: memref<1x64xf32, #tpu.memory_space<vmem>>, %arg4: memref<64x64xbf16, #tpu.memory_space<vmem>>, %arg5: memref<1x64xf32, #tpu.memory_space<vmem>>, %arg6: memref<64x128xbf16, #tpu.memory_space<vmem>>, %arg7: memref<1x128xf32, #tpu.memory_space<vmem>>, %arg8: memref<8x128xf32, #tpu.memory_space<vmem>>) attributes {dimension_semantics = [#tpu.dimension_semantics<parallel>], iteration_bounds = array<i64: 1>, scalar_prefetch = 0 : i64, scratch_operands = 0 : i64, tpu.core_type = #tpu.core_type<tc>, window_params = [{transform_indices = @transform_0, window_bounds = array<i64: 8, 32>}, {pipeline_mode = #tpu.pipeline_mode<synchronous>, transform_indices = @transform_1, window_bounds = array<i64: 32, 64>}, {pipeline_mode = #tpu.pipeline_mode<synchronous>, transform_indices = @transform_2, window_bounds = array<i64: 1, 64>}, {pipeline_mode = #tpu.pipeline_mode<synchronous>, transform_indices = @transform_3, window_bounds = array<i64: 64, 64>}, {pipeline_mode = #tpu.pipeline_mode<synchronous>, transform_indices = @transform_4, window_bounds = array<i64: 1, 64>}, {pipeline_mode = #tpu.pipeline_mode<synchronous>, transform_indices = @transform_5, window_bounds = array<i64: 64, 128>}, {pipeline_mode = #tpu.pipeline_mode<synchronous>, transform_indices = @transform_6, window_bounds = array<i64: 1, 128>}, {transform_indices = @transform_7, window_bounds = array<i64: 8, 128>}]} {
    %c0 = arith.constant 0 : index
    %c0_0 = arith.constant 0 : index
    %0 = vector.load %arg1[%c0, %c0_0] : memref<8x32xbf16, #tpu.memory_space<vmem>>, vector<8x32xbf16>
    %c0_1 = arith.constant 0 : index
    %c0_2 = arith.constant 0 : index
    %1 = vector.load %arg2[%c0_1, %c0_2] : memref<32x64xbf16, #tpu.memory_space<vmem>>, vector<32x64xbf16>
    %cst = arith.constant dense<0.000000e+00> : vector<8x64xf32>
    %2 = tpu.matmul %0, %1, %cst {dimension_numbers = #tpu.dot_dimension_numbers<[1], [0], [0], [1], [0, 0, 1, 1], [], []>} : vector<8x32xbf16>, vector<32x64xbf16>, vector<8x64xf32> -> vector<8x64xf32>
    %c0_3 = arith.constant 0 : index
    %c0_4 = arith.constant 0 : index
    %3 = vector.load %arg3[%c0_3, %c0_4] : memref<1x64xf32, #tpu.memory_space<vmem>>, vector<1x64xf32>
    %4 = vector.broadcast %3 : vector<1x64xf32> to vector<8x64xf32>
    %5 = arith.addf %2, %4 : vector<8x64xf32>
    %6 = math.tanh %5 : vector<8x64xf32>
    %7 = arith.truncf %6 : vector<8x64xf32> to vector<8x64xbf16>
    %c0_5 = arith.constant 0 : index
    %c0_6 = arith.constant 0 : index
    %8 = vector.load %arg4[%c0_5, %c0_6] : memref<64x64xbf16, #tpu.memory_space<vmem>>, vector<64x64xbf16>
    %cst_7 = arith.constant dense<0.000000e+00> : vector<8x64xf32>
    %9 = tpu.matmul %7, %8, %cst_7 {dimension_numbers = #tpu.dot_dimension_numbers<[1], [0], [0], [1], [0, 0, 1, 1], [], []>} : vector<8x64xbf16>, vector<64x64xbf16>, vector<8x64xf32> -> vector<8x64xf32>
    %c0_8 = arith.constant 0 : index
    %c0_9 = arith.constant 0 : index
    %10 = vector.load %arg5[%c0_8, %c0_9] : memref<1x64xf32, #tpu.memory_space<vmem>>, vector<1x64xf32>
    %11 = vector.broadcast %10 : vector<1x64xf32> to vector<8x64xf32>
    %12 = arith.addf %9, %11 : vector<8x64xf32>
    %13 = math.tanh %12 : vector<8x64xf32>
    %14 = arith.truncf %13 : vector<8x64xf32> to vector<8x64xbf16>
    %c0_10 = arith.constant 0 : index
    %c0_11 = arith.constant 0 : index
    %15 = vector.load %arg6[%c0_10, %c0_11] : memref<64x128xbf16, #tpu.memory_space<vmem>>, vector<64x128xbf16>
    %cst_12 = arith.constant dense<0.000000e+00> : vector<8x128xf32>
    %16 = tpu.matmul %14, %15, %cst_12 {dimension_numbers = #tpu.dot_dimension_numbers<[1], [0], [0], [1], [0, 0, 1, 1], [], []>} : vector<8x64xbf16>, vector<64x128xbf16>, vector<8x128xf32> -> vector<8x128xf32>
    %c0_13 = arith.constant 0 : index
    %c0_14 = arith.constant 0 : index
    %17 = vector.load %arg7[%c0_13, %c0_14] : memref<1x128xf32, #tpu.memory_space<vmem>>, vector<1x128xf32>
    %18 = vector.broadcast %17 : vector<1x128xf32> to vector<8x128xf32>
    %19 = arith.addf %16, %18 : vector<8x128xf32>
    %c0_15 = arith.constant 0 : index
    %c0_16 = arith.constant 0 : index
    %20 = vector.load %arg8[%c0_15, %c0_16] : memref<8x128xf32, #tpu.memory_space<vmem>>, vector<8x128xf32>
    tpu.vector_store %arg8[%c0_15, %c0_16], %19 {strides = array<i32>} : memref<8x128xf32, #tpu.memory_space<vmem>>, vector<8x128xf32>,
    return
  }
  func.func @transform_0(%arg0: i32) -> (i32, i32) {
    %c0_i32 = arith.constant 0 : i32
    %c0_i32_0 = arith.constant 0 : i32
    return %arg0, %c0_i32 : i32, i32
  }
  func.func @transform_1(%arg0: i32) -> (i32, i32) {
    %c0_i32 = arith.constant 0 : i32
    %c0_i32_0 = arith.constant 0 : i32
    %c0_i32_1 = arith.constant 0 : i32
    return %c0_i32, %c0_i32_0 : i32, i32
  }
  func.func @transform_2(%arg0: i32) -> (i32, i32) {
    %c0_i32 = arith.constant 0 : i32
    %c0_i32_0 = arith.constant 0 : i32
    %c0_i32_1 = arith.constant 0 : i32
    return %c0_i32, %c0_i32_0 : i32, i32
  }
  func.func @transform_3(%arg0: i32) -> (i32, i32) {
    %c0_i32 = arith.constant 0 : i32
    %c0_i32_0 = arith.constant 0 : i32
    %c0_i32_1 = arith.constant 0 : i32
    return %c0_i32, %c0_i32_0 : i32, i32
  }
  func.func @transform_4(%arg0: i32) -> (i32, i32) {
    %c0_i32 = arith.constant 0 : i32
    %c0_i32_0 = arith.constant 0 : i32
    %c0_i32_1 = arith.constant 0 : i32
    return %c0_i32, %c0_i32_0 : i32, i32
  }
  func.func @transform_5(%arg0: i32) -> (i32, i32) {
    %c0_i32 = arith.constant 0 : i32
    %c0_i32_0 = arith.constant 0 : i32
    %c0_i32_1 = arith.constant 0 : i32
    return %c0_i32, %c0_i32_0 : i32, i32
  }
  func.func @transform_6(%arg0: i32) -> (i32, i32) {
    %c0_i32 = arith.constant 0 : i32
    %c0_i32_0 = arith.constant 0 : i32
    %c0_i32_1 = arith.constant 0 : i32
    return %c0_i32, %c0_i32_0 : i32, i32
  }
  func.func @transform_7(%arg0: i32) -> (i32, i32) {
    %c0_i32 = arith.constant 0 : i32
    %c0_i32_0 = arith.constant 0 : i32
    return %arg0, %c0_i32 : i32, i32
  }
}

</mosaic_0001>

<bundles_post_ra>
// kernel: ppo_actor_forward.1
= control target key start
LH: loop header
LB: loop body
LE: loop exit
PB: predicated region body
PF: predicated region fallthrough
CT: control target
= control target key end

     0   :  { %vm48_vm0 = vcmask 261120   ;;  %vm103_vm1 = vcmask 523264   ;;  %s326_s1 = inlined_call_operand.vmem [shape: bf16[32,64], index: 1, kind: input, shape index: {}]   ;;  %s327_s3 = inlined_call_operand.vmem [shape: bf16[64,64], index: 3, kind: input, shape index: {}]   ;;  %s328_s2 = inlined_call_operand.vmem [shape: f32[1,64], index: 2, kind: input, shape index: {}]   ;;  %s329_s0 = inlined_call_operand.vmem [shape: bf16[8,32], index: 0, kind: input, shape index: {}]   ;;  %s330_s4 = inlined_call_operand.vmem [shape: f32[1,64], index: 4, kind: input, shape index: {}]   ;;  %s331_s5 = inlined_call_operand.vmem [shape: bf16[64,128], index: 5, kind: input, shape index: {}]   ;;  %s332_s6 = inlined_call_operand.vmem [shape: f32[1,128], index: 6, kind: input, shape index: {}]   ;;  %s333_s7 = inlined_call_operand.vmem [shape: f32[8,128], index: 7, kind: output, shape index: {}]  }
   0x1   :  { %v223_v0 = vld [vmem:[%s326_s1 + $0x8] sm:$0xff]  ;;  %v227_v1 = vld [vmem:[%s327_s3 + $0x18] sm:$0xff]  ;;  %v222_v2 = vld [vmem:[%s326_s1] sm:$0xff] }
   0x2   :  { %58 = vmatpush.bf16.msra.mxu0 %v223_v0  ;;  %111 = vmatpush.bf16.msra.mxu1 %v227_v1  ;;  %v27_v3 = vld [vmem:[%s329_s0] sm:$0xf]  ;;  %v226_v4 = vld [vmem:[%s327_s3 + $0x10] sm:$0xff]  ;;  %v225_v5 = vld [vmem:[%s327_s3 + $0x8] sm:$0xff] }
   0x3   :  { %v224_v6 = vld [vmem:[%s327_s3] sm:$0xff]  ;;  %v231_v7 = vld [vmem:[%s331_s5 + $0x18] sm:$0xff]  ;;  %v230_v14 = vld [vmem:[%s331_s5 + $0x10] sm:$0xff] }
   0x4   :  { %165 = vmatpush.bf16.msra.mxu2 %v231_v7  ;;  %v232_v8 = vld [vmem:[%s328_s2] ss:$0 sm:$0xff]  ;;  %v229_v15 = vld [vmem:[%s331_s5 + $0x8] sm:$0xff] }
   0x5   :  { %v228_v16 = vld [vmem:[%s331_s5] sm:$0xff] }
   0x6   :  { %59 = vmatpush.bf16.msra.mxu0 %v222_v2  ;;  %112 = vmatpush.bf16.msra.mxu1 %v226_v4  ;;  %v233_v17 = vld [vmem:[%s330_s4] ss:$0 sm:$0xff] }
   0x7   :  { %v234_v23 = vld [vmem:[%s332_s6] ss:$0 sm:$0xff] }
   0x8   :  { %166 = vmatpush.bf16.msra.mxu2 %v230_v14 }
   0x9   :  { %187 = vmatmul.msk.bf16.vlgmr.msra.gmra.mxu0 %vm48_vm0, %v27_v3 }
   0xa   :  { %113 = vmatpush.bf16.msra.mxu1 %v225_v5 }
   0xc   :  { %167 = vmatpush.bf16.msra.mxu2 %v229_v15 }
   0xe   :  { %114 = vmatpush.bf16.msra.mxu1 %v224_v6 }
  0x10   :  { %168 = vmatpush.bf16.msra.mxu2 %v228_v16 }
  0x86   :  { %v61_v9 = vpop.f32.mrf.mxu0 }
  0x87   :  { %v62_v10 = vadd.f32 %v232_v8, %v61_v9 }
  0x89   :  { %235 = vtanh.f32 %v62_v10 }
  0x8e   :  { %v63_v11 = vpop.f32.mrf.mxu0 }
  0x8f   :  { %v236_v12 = vpop.eup %235 }
  0x90   :  { %v66_v13 = vpack.c.bf16 %v236_v12, %v236_v12 }
  0x92   :  { %204 = vmatmul.msk.bf16.vlgmr.msra.gmra.mxu1 %vm103_vm1, %v66_v13 }
 0x10f   :  { %v116_v18 = vpop.f32.mrf.mxu1 }
 0x110   :  { %v117_v19 = vadd.f32 %v233_v17, %v116_v18 }
 0x112   :  { %237 = vtanh.f32 %v117_v19 }
 0x117   :  { %v118_v20 = vpop.f32.mrf.mxu1 }
 0x118   :  { %v238_v21 = vpop.eup %237 }
 0x119   :  { %v121_v22 = vpack.c.bf16 %v238_v21, %v238_v21 }
 0x11b   :  { %221 = vmatmul.msk.bf16.vlgmr.msra.gmra.mxu2 %vm103_vm1, %v121_v22 }
 0x19e   :  { %v170_v24 = vpop.f32.mrf.mxu2 }
 0x19f   :  { %v171_v25 = vadd.f32 %v234_v23, %v170_v24 }
 0x1a1   :  { %174 = vst [vmem:[%s333_s7] sm:$0xff] %v171_v25 }
 0x1a6   :  { %v172_v26 = vpop.f32.mrf.mxu2 }

</bundles_post_ra>
